<compile_context>
chip_gen: v6e
topology: v6e:2x2x1
jax: 0.10.0
libtpu: 0.0.40
codegen_flags: <defaults>
</compile_context>

<pallas_src>
import jax
import jax.numpy as jnp
from jax import lax
from jax.experimental import pallas as pl
from jax.experimental.pallas import tpu as pltpu

_LANES = 128
_TILE_ROWS = 8192                       # 8192 x 128 x 4B = 4 MiB per f32 block
_RAGGED_BLOCK_BYTES = 2 * 1024 * 1024   # per-block budget when last dim is not 128-packed
_SMALL_BYTES = 2 * 1024 * 1024          # gridless whole-array-block threshold
_VMEM_LIMIT_BYTES = 32 * 1024 * 1024    # safe on v5e/v6e (128 MiB phys) and v7x (64 MiB phys)

_TILED_PARAMS = pltpu.CompilerParams(
    dimension_semantics=("parallel",),
    vmem_limit_bytes=_VMEM_LIMIT_BYTES,
)


def _gelu_kernel(x_ref, o_ref):
    # Exact GELU (torch.nn.functional.gelu default): 0.5*x*(1+erf(x/sqrt(2))).
    # Kept erf-based to preserve module semantics; memory-bound on v5e/v6e.
    # TODO(synk): on v7x confirm the erf VPU polynomial doesn't flip the kernel
    # to VALU-bound; if an approximate GELU is acceptable there, use the tanh form.
    x = x_ref[...].astype(jnp.float32)
    inv_sqrt2 = jnp.float32(0.7071067811865476)
    y = jnp.float32(0.5) * x * (jnp.float32(1.0) + lax.erf(x * inv_sqrt2))
    o_ref[...] = y.astype(o_ref.dtype)


def _call_whole(x2d, dtype):
    # Whole-array block: exempt from the (8,128) divisibility rule, no grid,
    # no pipeline prologue/epilogue.
    return pl.pallas_call(
        _gelu_kernel,
        out_shape=jax.ShapeDtypeStruct(x2d.shape, dtype),
    )(x2d)


def _call_tiled(x2d, dtype, tile_rows):
    rows, cols = x2d.shape
    return pl.pallas_call(
        _gelu_kernel,
        out_shape=jax.ShapeDtypeStruct((rows, cols), dtype),
        grid=(pl.cdiv(rows, tile_rows),),
        in_specs=[pl.BlockSpec((tile_rows, cols), lambda i: (i, 0))],
        out_specs=pl.BlockSpec((tile_rows, cols), lambda i: (i, 0)),
        compiler_params=_TILED_PARAMS,
    )(x2d)


def gelu_pallas(x: jax.Array) -> jax.Array:
    """Elementwise exact GELU via Pallas TPU kernels. Works for any shape."""
    orig_shape = x.shape
    dtype = x.dtype
    n = x.size
    if n == 0:
        return x
    itemsize = jnp.dtype(dtype).itemsize

    # ---- Small inputs: single whole-array VMEM block; zero pad/slice copies.
    if n * itemsize <= _SMALL_BYTES:
        x2d = x.reshape(-1, orig_shape[-1]) if x.ndim >= 2 else x.reshape(1, -1)
        return _call_whole(x2d, dtype).reshape(orig_shape)

    # ---- Large, 128-aligned total size: lane-dense (rows, 128) view, 4 MiB blocks.
    if n % _LANES == 0:
        rows = n // _LANES
        x2d = x.reshape(rows, _LANES)
        tile_rows = _TILE_ROWS if rows > _TILE_ROWS else rows   # full extent if smaller
        return _call_tiled(x2d, dtype, tile_rows).reshape(orig_shape)

    # ---- Large, unaligned total size, >=2-D: tile the collapsed leading dims with
    # ---- a full-extent last dim; Pallas masks the ragged last block. No jnp.pad,
    # ---- no output slice -> no extra full-array HBM passes.
    if x.ndim >= 2:
        last = orig_shape[-1]
        lead = n // last
        row_bytes = last * itemsize
        if row_bytes <= _RAGGED_BLOCK_BYTES:
            x2d = x.reshape(lead, last)
            tile_rows = max(8, (_RAGGED_BLOCK_BYTES // row_bytes) // 8 * 8)
            if tile_rows >= lead:
                tile_rows = lead      # full extent (exempt from the /8 rule)
            return _call_tiled(x2d, dtype, tile_rows).reshape(orig_shape)

    # ---- Fallback (e.g. huge unaligned 1-D input, or one enormous row): pad to lanes.
    rows = pl.cdiv(n, _LANES)
    padded = rows * _LANES
    xf = jnp.pad(x.reshape(-1), (0, padded - n))   # GELU(0) == 0; sliced away below
    x2d = xf.reshape(rows, _LANES)
    tile_rows = _TILE_ROWS if rows > _TILE_ROWS else rows
    out = _call_tiled(x2d, dtype, tile_rows)
    return out.reshape(-1)[:n].reshape(orig_shape)


if __name__ == "__main__":
    key = jax.random.PRNGKey(0)
    k0, k1, k2 = jax.random.split(key, 3)

    # Matches the module's example input: torch.rand((1, 10, 100)) -> U[0, 1)
    hidden_states = jax.random.uniform(k0, (1, 10, 100), dtype=jnp.float32)
    # NOTE: LayerNorm(100) params from __init__ are never used by forward() -> omitted.

    y = gelu_pallas(hidden_states)
    jax.block_until_ready(y)
    y_ref = jax.nn.gelu(hidden_states, approximate=False)
    assert y.shape == hidden_states.shape
    assert jnp.allclose(y, y_ref, atol=1e-6, rtol=1e-6)

    # Large, 128-aligned activation -> lane-dense tiled grid path (4 MiB blocks).
    big = jax.random.normal(k1, (4, 1024, 1024), dtype=jnp.float32)
    yb = gelu_pallas(big)
    jax.block_until_ready(yb)
    yb_ref = jax.nn.gelu(big, approximate=False)
    assert yb.shape == big.shape
    assert jnp.allclose(yb, yb_ref, atol=1e-5, rtol=1e-5)

    # Large, non-128-multiple activation -> ragged (full-extent last dim) path,
    # handled in-kernel without any pad/slice HBM passes.
    ragged = jax.random.normal(k2, (9000, 300), dtype=jnp.float32)
    yr = gelu_pallas(ragged)
    jax.block_until_ready(yr)
    yr_ref = jax.nn.gelu(ragged, approximate=False)
    assert yr.shape == ragged.shape
    assert jnp.allclose(yr, yr_ref, atol=1e-5, rtol=1e-5)

    print("KERNEL_OK")
</pallas_src>

<mosaic_0001>
module attributes {stable_mosaic.version = 11 : i64} {
  func.func @_gelu_kernel(%arg0: memref<10x100xf32, #tpu.memory_space<vmem>>, %arg1: memref<10x100xf32, #tpu.memory_space<vmem>>) attributes {dimension_semantics = [], scalar_prefetch = 0 : i64, scratch_operands = 0 : i64, tpu.core_type = #tpu.core_type<tc>} {
    %c0 = arith.constant 0 : index
    %c0_0 = arith.constant 0 : index
    %0 = vector.load %arg0[%c0, %c0_0] : memref<10x100xf32, #tpu.memory_space<vmem>>, vector<10x100xf32>
    %cst = arith.constant 5.000000e-01 : f32
    %1 = vector.broadcast %cst : f32 to vector<10x100xf32>
    %2 = arith.mulf %1, %0 : vector<10x100xf32>
    %cst_1 = arith.constant 0.707106769 : f32
    %3 = vector.broadcast %cst_1 : f32 to vector<10x100xf32>
    %4 = arith.mulf %0, %3 : vector<10x100xf32>
    %5 = math.erf %4 : vector<10x100xf32>
    %cst_2 = arith.constant 1.000000e+00 : f32
    %6 = vector.broadcast %cst_2 : f32 to vector<10x100xf32>
    %7 = arith.addf %6, %5 : vector<10x100xf32>
    %8 = arith.mulf %2, %7 : vector<10x100xf32>
    %c0_3 = arith.constant 0 : index
    %c0_4 = arith.constant 0 : index
    %9 = vector.load %arg1[%c0_3, %c0_4] : memref<10x100xf32, #tpu.memory_space<vmem>>, vector<10x100xf32>
    tpu.vector_store %arg1[%c0_3, %c0_4], %8 {strides = array<i32>} : memref<10x100xf32, #tpu.memory_space<vmem>>, vector<10x100xf32>,
    return
  }
}

</mosaic_0001>

<bundles_post_ra>
// kernel: tpu_custom_call.1
= control target key start
LH: loop header
LB: loop body
LE: loop exit
PB: predicated region body
PF: predicated region fallthrough
CT: control target
= control target key end

     0   :  { %6 = vsyncpa [#allocation3], 0  ;;  %s134_s0 = inlined_call_operand.hbm [shape: f32[10,100], index: 0, kind: input, shape index: {}]   ;;  %s135_s1 = inlined_call_operand.hbm [shape: f32[10,100], index: 1, kind: output, shape index: {}]  }
   0x1   :  { %7 = vsyncpa [#allocation4], 0  ;;  %s108_s6 = smov [#allocation2]  }
   0x2   :  { %s13_s7 = sshll.u32 %s108_s6, 4  ;;  %s14_s7 = int_to_ptr.vmem [resolvable:$true] %s13_s7 }
   0x3   :  { %s72_s8 = scalar_lea.vmem %s14_s7, 256  ;;  %p77_p1 = scmp.lt.s32.totalorder %s14_s7, %s14_s7 }
   0x4   :  { %p73_p0 = scmp.ne.s32.totalorder %s14_s7, %s72_s8  ;;  %p78_p2 = scmp.lt.s32.totalorder %s72_s8, %s72_s8 }
   0x6   :  { %p79_p3 = por %p78_p2, %p77_p1 }
   0x8   :  { %p80_p4 = pnand %p79_p3, %p73_p0 }
   0xa   :  { %83 = shalt.err (!%p80_p4)
}
   0xb   :  { %s109_s9 = smov 128   ;;  %s110_s10 = smov 8  }
   0xc   :  { %19 = dma.hbm_to_vmem [thread:$0]  %s134_s0, 256, %s14_s7, [#allocation3], %s109_s9, %s109_s9, %s110_s10  }
   0xd   :  { %104 = dma.done.wait [#allocation3], 256  }
   0xe   :  { %105 = vsyncadd [#allocation3], 4294967040  ;;  %v23_v0 = vld [vmem:[#allocation2] sm:$0xff]  ;;  %v24_v1 = vld [vmem:[#allocation2 + $0x8] sm:$0x3]  ;;  %s111_s13 = smov [#allocation5]  }
   0xf   :  { %v27_v2 = vmul.f32 0.70710677, %v23_v0  ;;  %v28_v3 = vmul.f32 0.70710677, %v24_v1  ;;  %v25_v4 = vmul.f32 0.5, %v23_v0  ;;  %v26_v6 = vmul.f32 0.5, %v24_v1 }
  0x10   :  { %s44_s14 = sshll.u32 %s111_s13, 4  ;;  %vm35_vm0 = vcmask 818176   ;;  %vm37_vm1 = vcmask 812032   ;;  %s45_s14 = int_to_ptr.vmem [resolvable:$true] %s44_s14 }
  0x11   :  { %60 = verf.f32 %v27_v2  ;;  %s84_s0 = scalar_lea.vmem %s45_s14, 256  ;;  %p89_p6 = scmp.lt.s32.totalorder %s45_s14, %s45_s14 }
  0x12   :  { %62 = verf.f32 %v28_v3  ;;  %p85_p5 = scmp.ne.s32.totalorder %s45_s14, %s84_s0  ;;  %p90_p7 = scmp.lt.s32.totalorder %s84_s0, %s84_s0 }
  0x14   :  { %p91_p8 = por %p90_p7, %p89_p6 }
  0x16   :  { %p92_p9 = pnand %p91_p8, %p85_p5 }
  0x1e   :  { %v61_v5 = vpop.eup %60 }
  0x1f   :  { %v63_v7 = vpop.eup %62  ;;  %v31_v8 = vadd.f32 1.0, %v61_v5 }
  0x20   :  { %v32_v9 = vadd.f32 1.0, %v63_v7 }
  0x21   :  { %v33_v10 = vmul.f32 %v31_v8, %v25_v4 }
  0x22   :  { %v34_v11 = vmul.f32 %v32_v9, %v26_v6 }
  0x23   :  { %36 = vst.msk [vmem:[#allocation5] sm:$0xff] %vm35_vm0, %v33_v10 }
  0x24   :  { %38 = vst.msk [vmem:[#allocation5 + $0x8] sm:$0x3] %vm37_vm1, %v34_v11 }
  0x25   :  { %95 = shalt.err (!%p92_p9)
}
  0x26   :  { %50 = dma.vmem_to_hbm [thread:$0]  %s45_s14, 256, %s135_s1, [#allocation4], %s109_s9, %s109_s9, %s110_s10  }
  0x27   :  { %106 = dma.done.wait [#allocation4], 256  }
  0x28   :  { %107 = vsyncadd [#allocation4], 4294967040 }
  0x29   :  { %54 = vsyncpa [#allocation3], 1 }
  0x2a   :  { %55 = vsyncpa [#allocation4], 1 }

</bundles_post_ra>
